<compile_context>
chip_gen: v5e
topology: v5e:2x2
jax: 0.10.0
libtpu: 0.0.40
codegen_flags: <defaults>
</compile_context>

<pallas_src>
import math

import numpy as np
import jax
import jax.numpy as jnp
from jax.experimental import pallas as pl
from jax.experimental.pallas import tpu as pltpu  # noqa: F401  (imported per template)

# ----------------------------- small config ---------------------------------
D_MODEL = 32        # model_config.d_model
N_EXPERTS = 8       # ffn_config.moe_n_experts  (tables have N_EXPERTS**2 rows)
TOP_K = 2           # ffn_config.moe_top_k
N_HEADS = 2         # ffn_config.millions_moe_n_heads
D_KEYS = 16         # ffn_config.millions_moe_d_keys (half = 8)
BATCH = 2
SEQ = 8

HALF = D_KEYS // 2
N_TABLE = N_EXPERTS ** 2              # 64 expert rows
TABLE_PAD = 128                       # pad expert axis to a full 128-lane vreg
Q_DIM = N_HEADS * D_KEYS              # 32 query features (h, subkey-set, channel)
S_DIM = N_HEADS * 2 * N_EXPERTS       # 32 sub-key scores  (h, subkey-set, expert)
W_COLS = TABLE_PAD + S_DIM            # 160 = concat(down-proj lanes, score lanes)


# --------------------- deterministic parameter init -------------------------
def get_uniform_keys(n_keys, dim, seed):
    """Same as the PyTorch helper (numpy only)."""
    rng = np.random.RandomState(seed)
    bound = 1 / math.sqrt(dim)
    return rng.uniform(-bound, bound, (n_keys, dim)).astype(np.float32)


def init_params(key):
    k_wq, k_bq, k_down, k_up = jax.random.split(key, 4)
    bound = 1.0 / math.sqrt(D_MODEL)
    params = {
        # nn.Linear(d_model, n_heads*d_keys): weight (out,in), bias (out,)
        "wq": jax.random.uniform(k_wq, (Q_DIM, D_MODEL),
                                 minval=-bound, maxval=bound, dtype=jnp.float32),
        "bq": jax.random.uniform(k_bq, (Q_DIM,),
                                 minval=-bound, maxval=bound, dtype=jnp.float32),
        # nn.Embedding(n_experts**2, d_model), normal(0, d_model**-0.5)
        "w_down": jax.random.normal(k_down, (N_TABLE, D_MODEL),
                                    dtype=jnp.float32) * (D_MODEL ** -0.5),
        "w_up": jax.random.normal(k_up, (N_TABLE, D_MODEL),
                                  dtype=jnp.float32) * (D_MODEL ** -0.5),
        # product keys: (n_heads, 2, n_experts, d_keys//2), exact torch init
        "keys": jnp.asarray(
            np.stack([get_uniform_keys(N_EXPERTS, HALF, seed=2 * i + j)
                      for i in range(N_HEADS) for j in range(2)]
                     ).reshape(N_HEADS, 2, N_EXPERTS, HALF)),
    }
    return params


def prepare_params(params):
    """One-time host-side algebraic preprocessing of the raw module parameters."""
    # Block-diagonal sub-key matrix:
    #   rows = query features ordered (head, subkey_set, channel)
    #   cols = sub-key scores  ordered (head, subkey_set, expert)
    kbd = np.zeros((Q_DIM, S_DIM), np.float32)
    keys = np.asarray(params["keys"])
    for h in range(N_HEADS):
        for s in range(2):
            b = 2 * h + s
            kbd[b * HALF:(b + 1) * HALF,
                b * N_EXPERTS:(b + 1) * N_EXPERTS] = keys[h, s].T
    kbd = jnp.asarray(kbd)

    # Fold the query projection into the sub-key scores:
    #   sc = (x @ wq.T + bq) @ kbd = x @ (wq.T @ kbd) + (bq @ kbd)
    wqk = params["wq"].T @ kbd                                       # (D_MODEL, S_DIM)
    bqk = (params["bq"] @ kbd).reshape(1, S_DIM)                     # (1, S_DIM)

    # Pre-transposed, zero-padded down-projection table, concatenated with the
    # folded score weights into a single lane-dense RHS (down-proj lanes first
    # so the big (NT,128) slice stays vreg-aligned).
    wd_t = jnp.pad(params["w_down"].T,
                   ((0, 0), (0, TABLE_PAD - N_TABLE)))               # (D_MODEL, 128)
    w_cat = jnp.concatenate([wd_t, wqk], axis=1)                     # (D_MODEL, 160)

    w_up = jnp.pad(params["w_up"],
                   ((0, TABLE_PAD - N_TABLE), (0, 0)))               # (128, D_MODEL)
    return {"w_cat": w_cat, "bqk": bqk, "w_up": w_up}


# ------------------------------ fused kernel ---------------------------------
def _fused_moe_kernel(x_ref, w_ref, bqk_ref, wu_ref, o_ref):
    nt = x_ref.shape[0]
    x = x_ref[...]                                                   # (NT, D)

    # ---- 1) ONE matmul: PEER pre-activation + all sub-key scores ------------
    y = jnp.dot(x, w_ref[...], preferred_element_type=jnp.float32)  # (NT, 160)
    a_pre = y[:, :TABLE_PAD]                                         # (NT, 128) lane-aligned
    sc = y[:, TABLE_PAD:] + bqk_ref[...]                             # (NT, 32) scores

    # ---- 2) cartesian top-2 routing + softmax, fully in-kernel --------------
    iota_s = jax.lax.broadcasted_iota(jnp.int32, (nt, S_DIM), 1)     # column index
    iota_tab = jax.lax.broadcasted_iota(jnp.int32, (nt, TABLE_PAD), 1)
    neg_inf = jnp.float32(-jnp.inf)
    big_col = jnp.int32(S_DIM)

    def top2_segment(base):
        # Top-2 of an 8-wide score segment without sub-vreg lane slicing:
        # mask the full (NT, 32) tile to the segment [base, base+8).
        in_seg = jnp.logical_and(iota_s >= base, iota_s < base + N_EXPERTS)
        s_seg = jnp.where(in_seg, sc, neg_inf)
        v1 = jnp.max(s_seg, axis=-1, keepdims=True)
        c1 = jnp.min(jnp.where(s_seg == v1, iota_s, big_col),
                     axis=-1, keepdims=True)
        s_m = jnp.where(iota_s == c1, neg_inf, s_seg)
        v2 = jnp.max(s_m, axis=-1, keepdims=True)
        c2 = jnp.min(jnp.where(s_m == v2, iota_s, big_col),
                     axis=-1, keepdims=True)
        return v1, c1 - base, v2, c2 - base                          # int32 expert indices

    # per-expert softmax mass, accumulated per token row (reduced below)
    w_rows = jnp.zeros((nt, TABLE_PAD), jnp.float32)
    for h in range(N_HEADS):                                         # static unroll (N_HEADS = 2)
        base = 2 * h * N_EXPERTS
        v1a, i1a, v1b, i1b = top2_segment(base)                      # subkey set 0: best / 2nd
        v2a, i2a, v2b, i2b = top2_segment(base + N_EXPERTS)          # subkey set 1: best / 2nd
        # Cartesian product of the two top-2 lists:
        #  (a,a) is always the argmax; (b,b) can never make the top-2,
        #  so the second-best is max((a,b), (b,a)) (>= matches flat-order ties).
        s_best = v1a + v2a
        e_best = i1a * N_EXPERTS + i2a
        take_ab = (v1a + v2b) >= (v1b + v2a)
        s_2nd = jnp.where(take_ab, v1a + v2b, v1b + v2a)
        e_2nd = jnp.where(take_ab,
                          i1a * N_EXPERTS + i2b,
                          i1b * N_EXPERTS + i2a)
        # softmax over the K=2 retained scores (s_2nd <= s_best -> stable)
        d = jnp.exp(s_2nd - s_best)
        inv = 1.0 / (1.0 + d)
        p_best = inv
        p_2nd = d * inv
        # fused one-hot scatter-add into per-expert bins (e_best != e_2nd)
        w_rows = w_rows + jnp.where(iota_tab == e_best, p_best,
                                    jnp.where(iota_tab == e_2nd, p_2nd, 0.0))

    w_per_expert = jnp.sum(w_rows, axis=0, keepdims=True)            # (1, 128)

    # ---- 3) PEER: expert activation, scale, up-proj --------------------------
    # TODO(synk): transformer_utils.create_activation_function is unavailable;
    # tanh-approx GELU is used as the expert activation.
    a = jax.nn.gelu(a_pre, approximate=True)
    o_ref[...] = jnp.dot(a * w_per_expert, wu_ref[...],
                         preferred_element_type=jnp.float32)         # (NT, D)


# ---------------------------- forward (wrapper) -------------------------------
def _forward_impl(x, prep):
    n, t, d = x.shape
    nt = n * t
    x2 = x.reshape(nt, d)
    out = pl.pallas_call(
        _fused_moe_kernel,
        out_shape=jax.ShapeDtypeStruct((nt, d), jnp.float32),
        in_specs=[
            pl.BlockSpec((nt, d), lambda: (0, 0)),
            pl.BlockSpec((D_MODEL, W_COLS), lambda: (0, 0)),
            pl.BlockSpec((1, S_DIM), lambda: (0, 0)),
            pl.BlockSpec((TABLE_PAD, D_MODEL), lambda: (0, 0)),
        ],
        out_specs=pl.BlockSpec((nt, d), lambda: (0, 0)),
    )(x2, prep["w_cat"], prep["bqk"], prep["w_up"])
    # dropout == identity (eval)
    return out.reshape(n, t, d), None


millions_moe_forward = jax.jit(_forward_impl)


# ------------------------- pure-JAX reference --------------------------------
def reference_forward(x, params):
    n, t, d = x.shape
    x2 = x.reshape(n * t, d)
    nt = n * t

    qh = (x2 @ params["wq"].T + params["bq"]).reshape(nt, N_HEADS, 2, HALF)
    qh = jnp.transpose(qh, (1, 2, 0, 3))
    sc = jnp.einsum("hsnc,hsec->hsne", qh, params["keys"])
    s1, i1 = jax.lax.top_k(sc[:, 0], TOP_K)
    s2, i2 = jax.lax.top_k(sc[:, 1], TOP_K)
    all_s = (s1[..., :, None] + s2[..., None, :]).reshape(N_HEADS, nt, TOP_K * TOP_K)
    all_i = (i1[..., :, None] * N_EXPERTS + i2[..., None, :]).reshape(
        N_HEADS, nt, TOP_K * TOP_K)
    s, best = jax.lax.top_k(all_s, TOP_K)
    idx = jnp.take_along_axis(all_i, best, axis=-1)
    s = jnp.transpose(s, (1, 0, 2)).reshape(nt * N_HEADS, TOP_K)
    idx = jnp.transpose(idx, (1, 0, 2)).reshape(nt * N_HEADS, TOP_K)

    w_down = params["w_down"][idx]                                # (M, K, D)
    w_up = params["w_up"][idx]                                    # (M, K, D)
    a = jnp.einsum("ntd,mkd->ntmk", x, w_down)                    # torch '...d,...hkd->...hk'
    a = jax.nn.gelu(a, approximate=True)
    vals = a * jax.nn.softmax(s, axis=-1)[None, None]
    out = jnp.einsum("ntmk,mkd->ntd", vals, w_up)
    return out


# --------------------------------- main ---------------------------------------
if __name__ == "__main__":
    root = jax.random.PRNGKey(0)
    k_params, k_x = jax.random.split(root)
    params = init_params(k_params)
    x = jax.random.normal(k_x, (BATCH, SEQ, D_MODEL), dtype=jnp.float32)

    prep = prepare_params(params)                     # one-time preprocessing
    out, aux = millions_moe_forward(x, prep)
    out = jax.block_until_ready(out)
    assert out.shape == (BATCH, SEQ, D_MODEL) and aux is None

    ref = jax.block_until_ready(reference_forward(x, params))
    np.testing.assert_allclose(np.asarray(out), np.asarray(ref),
                               rtol=1e-4, atol=1e-4)
    print("KERNEL_OK")
</pallas_src>

<mosaic_0001>
module attributes {stable_mosaic.version = 11 : i64} {
  func.func @_fused_moe_kernel(%arg0: memref<16x32xf32, #tpu.memory_space<vmem>>, %arg1: memref<32x160xf32, #tpu.memory_space<vmem>>, %arg2: memref<1x32xf32, #tpu.memory_space<vmem>>, %arg3: memref<128x32xf32, #tpu.memory_space<vmem>>, %arg4: memref<16x32xf32, #tpu.memory_space<vmem>>) attributes {dimension_semantics = [], scalar_prefetch = 0 : i64, scratch_operands = 0 : i64, tpu.core_type = #tpu.core_type<tc>} {
    %c0 = arith.constant 0 : index
    %c0_0 = arith.constant 0 : index
    %0 = vector.load %arg0[%c0, %c0_0] : memref<16x32xf32, #tpu.memory_space<vmem>>, vector<16x32xf32>
    %c0_1 = arith.constant 0 : index
    %c0_2 = arith.constant 0 : index
    %1 = vector.load %arg1[%c0_1, %c0_2] : memref<32x160xf32, #tpu.memory_space<vmem>>, vector<32x160xf32>
    %cst = arith.constant dense<0.000000e+00> : vector<16x160xf32>
    %2 = tpu.matmul %0, %1, %cst {dimension_numbers = #tpu.dot_dimension_numbers<[1], [0], [0], [1], [0, 0, 1, 1], [], []>} : vector<16x32xf32>, vector<32x160xf32>, vector<16x160xf32> -> vector<16x160xf32>
    %3 = vector.extract_strided_slice %2 {offsets = [0, 0], sizes = [16, 128], strides = [1, 1]} : vector<16x160xf32> to vector<16x128xf32>
    %4 = vector.extract_strided_slice %2 {offsets = [0, 128], sizes = [16, 32], strides = [1, 1]} : vector<16x160xf32> to vector<16x32xf32>
    %c0_3 = arith.constant 0 : index
    %c0_4 = arith.constant 0 : index
    %5 = vector.load %arg2[%c0_3, %c0_4] : memref<1x32xf32, #tpu.memory_space<vmem>>, vector<1x32xf32>
    %6 = vector.broadcast %5 : vector<1x32xf32> to vector<16x32xf32>
    %7 = arith.addf %4, %6 : vector<16x32xf32>
    %8 = tpu.iota {dimensions = array<i32: 1>} : vector<16x32xi32>
    %9 = tpu.iota {dimensions = array<i32: 1>} : vector<16x128xi32>
    %cst_5 = arith.constant 0.000000e+00 : f32
    %10 = vector.broadcast %cst_5 : f32 to vector<16x128xf32>
    %c0_i32 = arith.constant 0 : i32
    %11 = vector.broadcast %c0_i32 : i32 to vector<16x32xi32>
    %12 = arith.cmpi sge, %8, %11 : vector<16x32xi32>
    %c8_i32 = arith.constant 8 : i32
    %13 = vector.broadcast %c8_i32 : i32 to vector<16x32xi32>
    %14 = arith.cmpi slt, %8, %13 : vector<16x32xi32>
    %15 = arith.andi %12, %14 : vector<16x32xi1>
    %cst_6 = arith.constant 0xFF800000 : f32
    %16 = vector.broadcast %cst_6 : f32 to vector<16x32xf32>
    %17 = arith.select %15, %7, %16 : vector<16x32xi1>, vector<16x32xf32>
    %cst_7 = arith.constant dense<0xFF800000> : vector<16xf32>
    %18 = vector.multi_reduction <maximumf>, %17, %cst_7 [1] : vector<16x32xf32> to vector<16xf32>
    %19 = vector.shape_cast %18 : vector<16xf32> to vector<16x1xf32>
    %20 = vector.broadcast %19 : vector<16x1xf32> to vector<16x32xf32>
    %21 = arith.cmpf oeq, %17, %20 : vector<16x32xf32>
    %c32_i32 = arith.constant 32 : i32
    %22 = vector.broadcast %c32_i32 : i32 to vector<16x32xi32>
    %23 = arith.select %21, %8, %22 : vector<16x32xi1>, vector<16x32xi32>
    %cst_8 = arith.constant dense<2147483647> : vector<16xi32>
    %24 = vector.multi_reduction <minsi>, %23, %cst_8 [1] : vector<16x32xi32> to vector<16xi32>
    %25 = vector.shape_cast %24 : vector<16xi32> to vector<16x1xi32>
    %26 = vector.broadcast %25 : vector<16x1xi32> to vector<16x32xi32>
    %27 = arith.cmpi eq, %8, %26 : vector<16x32xi32>
    %cst_9 = arith.constant 0xFF800000 : f32
    %28 = vector.broadcast %cst_9 : f32 to vector<16x32xf32>
    %29 = arith.select %27, %28, %17 : vector<16x32xi1>, vector<16x32xf32>
    %cst_10 = arith.constant dense<0xFF800000> : vector<16xf32>
    %30 = vector.multi_reduction <maximumf>, %29, %cst_10 [1] : vector<16x32xf32> to vector<16xf32>
    %31 = vector.shape_cast %30 : vector<16xf32> to vector<16x1xf32>
    %32 = vector.broadcast %31 : vector<16x1xf32> to vector<16x32xf32>
    %33 = arith.cmpf oeq, %29, %32 : vector<16x32xf32>
    %c32_i32_11 = arith.constant 32 : i32
    %34 = vector.broadcast %c32_i32_11 : i32 to vector<16x32xi32>
    %35 = arith.select %33, %8, %34 : vector<16x32xi1>, vector<16x32xi32>
    %cst_12 = arith.constant dense<2147483647> : vector<16xi32>
    %36 = vector.multi_reduction <minsi>, %35, %cst_12 [1] : vector<16x32xi32> to vector<16xi32>
    %37 = vector.shape_cast %36 : vector<16xi32> to vector<16x1xi32>
    %c0_i32_13 = arith.constant 0 : i32
    %38 = vector.broadcast %c0_i32_13 : i32 to vector<16x1xi32>
    %39 = arith.subi %25, %38 : vector<16x1xi32>
    %c0_i32_14 = arith.constant 0 : i32
    %40 = vector.broadcast %c0_i32_14 : i32 to vector<16x1xi32>
    %41 = arith.subi %37, %40 : vector<16x1xi32>
    %c8_i32_15 = arith.constant 8 : i32
    %42 = vector.broadcast %c8_i32_15 : i32 to vector<16x32xi32>
    %43 = arith.cmpi sge, %8, %42 : vector<16x32xi32>
    %c16_i32 = arith.constant 16 : i32
    %44 = vector.broadcast %c16_i32 : i32 to vector<16x32xi32>
    %45 = arith.cmpi slt, %8, %44 : vector<16x32xi32>
    %46 = arith.andi %43, %45 : vector<16x32xi1>
    %cst_16 = arith.constant 0xFF800000 : f32
    %47 = vector.broadcast %cst_16 : f32 to vector<16x32xf32>
    %48 = arith.select %46, %7, %47 : vector<16x32xi1>, vector<16x32xf32>
    %cst_17 = arith.constant dense<0xFF800000> : vector<16xf32>
    %49 = vector.multi_reduction <maximumf>, %48, %cst_17 [1] : vector<16x32xf32> to vector<16xf32>
    %50 = vector.shape_cast %49 : vector<16xf32> to vector<16x1xf32>
    %51 = vector.broadcast %50 : vector<16x1xf32> to vector<16x32xf32>
    %52 = arith.cmpf oeq, %48, %51 : vector<16x32xf32>
    %c32_i32_18 = arith.constant 32 : i32
    %53 = vector.broadcast %c32_i32_18 : i32 to vector<16x32xi32>
    %54 = arith.select %52, %8, %53 : vector<16x32xi1>, vector<16x32xi32>
    %cst_19 = arith.constant dense<2147483647> : vector<16xi32>
    %55 = vector.multi_reduction <minsi>, %54, %cst_19 [1] : vector<16x32xi32> to vector<16xi32>
    %56 = vector.shape_cast %55 : vector<16xi32> to vector<16x1xi32>
    %57 = vector.broadcast %56 : vector<16x1xi32> to vector<16x32xi32>
    %58 = arith.cmpi eq, %8, %57 : vector<16x32xi32>
    %cst_20 = arith.constant 0xFF800000 : f32
    %59 = vector.broadcast %cst_20 : f32 to vector<16x32xf32>
    %60 = arith.select %58, %59, %48 : vector<16x32xi1>, vector<16x32xf32>
    %cst_21 = arith.constant dense<0xFF800000> : vector<16xf32>
    %61 = vector.multi_reduction <maximumf>, %60, %cst_21 [1] : vector<16x32xf32> to vector<16xf32>
    %62 = vector.shape_cast %61 : vector<16xf32> to vector<16x1xf32>
    %63 = vector.broadcast %62 : vector<16x1xf32> to vector<16x32xf32>
    %64 = arith.cmpf oeq, %60, %63 : vector<16x32xf32>
    %c32_i32_22 = arith.constant 32 : i32
    %65 = vector.broadcast %c32_i32_22 : i32 to vector<16x32xi32>
    %66 = arith.select %64, %8, %65 : vector<16x32xi1>, vector<16x32xi32>
    %cst_23 = arith.constant dense<2147483647> : vector<16xi32>
    %67 = vector.multi_reduction <minsi>, %66, %cst_23 [1] : vector<16x32xi32> to vector<16xi32>
    %68 = vector.shape_cast %67 : vector<16xi32> to vector<16x1xi32>
    %c8_i32_24 = arith.constant 8 : i32
    %69 = vector.broadcast %c8_i32_24 : i32 to vector<16x1xi32>
    %70 = arith.subi %56, %69 : vector<16x1xi32>
    %c8_i32_25 = arith.constant 8 : i32
    %71 = vector.broadcast %c8_i32_25 : i32 to vector<16x1xi32>
    %72 = arith.subi %68, %71 : vector<16x1xi32>
    %73 = arith.addf %19, %50 : vector<16x1xf32>
    %c8_i32_26 = arith.constant 8 : i32
    %74 = vector.broadcast %c8_i32_26 : i32 to vector<16x1xi32>
    %75 = arith.muli %39, %74 : vector<16x1xi32>
    %76 = arith.addi %75, %70 : vector<16x1xi32>
    %77 = arith.addf %19, %62 : vector<16x1xf32>
    %78 = arith.addf %31, %50 : vector<16x1xf32>
    %79 = arith.cmpf oge, %77, %78 : vector<16x1xf32>
    %80 = arith.addf %19, %62 : vector<16x1xf32>
    %81 = arith.addf %31, %50 : vector<16x1xf32>
    %82 = arith.select %79, %80, %81 : vector<16x1xi1>, vector<16x1xf32>
    %c8_i32_27 = arith.constant 8 : i32
    %83 = vector.broadcast %c8_i32_27 : i32 to vector<16x1xi32>
    %84 = arith.muli %39, %83 : vector<16x1xi32>
    %85 = arith.addi %84, %72 : vector<16x1xi32>
    %c8_i32_28 = arith.constant 8 : i32
    %86 = vector.broadcast %c8_i32_28 : i32 to vector<16x1xi32>
    %87 = arith.muli %41, %86 : vector<16x1xi32>
    %88 = arith.addi %87, %70 : vector<16x1xi32>
    %89 = arith.select %79, %85, %88 : vector<16x1xi1>, vector<16x1xi32>
    %90 = arith.subf %82, %73 : vector<16x1xf32>
    %91 = math.exp %90 : vector<16x1xf32>
    %cst_29 = arith.constant 1.000000e+00 : f32
    %92 = vector.broadcast %cst_29 : f32 to vector<16x1xf32>
    %93 = arith.addf %92, %91 : vector<16x1xf32>
    %cst_30 = arith.constant 1.000000e+00 : f32
    %94 = vector.broadcast %cst_30 : f32 to vector<16x1xf32>
    %95 = arith.divf %94, %93 : vector<16x1xf32>
    %96 = arith.mulf %91, %95 : vector<16x1xf32>
    %97 = vector.broadcast %76 : vector<16x1xi32> to vector<16x128xi32>
    %98 = arith.cmpi eq, %9, %97 : vector<16x128xi32>
    %99 = vector.broadcast %89 : vector<16x1xi32> to vector<16x128xi32>
    %100 = arith.cmpi eq, %9, %99 : vector<16x128xi32>
    %cst_31 = arith.constant 0.000000e+00 : f32
    %101 = vector.shape_cast %96 : vector<16x1xf32> to vector<16x1xf32>
    %102 = vector.broadcast %101 : vector<16x1xf32> to vector<16x128xf32>
    %103 = vector.broadcast %cst_31 : f32 to vector<16x128xf32>
    %104 = arith.select %100, %102, %103 : vector<16x128xi1>, vector<16x128xf32>
    %105 = vector.shape_cast %95 : vector<16x1xf32> to vector<16x1xf32>
    %106 = vector.broadcast %105 : vector<16x1xf32> to vector<16x128xf32>
    %107 = arith.select %98, %106, %104 : vector<16x128xi1>, vector<16x128xf32>
    %108 = arith.addf %10, %107 : vector<16x128xf32>
    %c16_i32_32 = arith.constant 16 : i32
    %109 = vector.broadcast %c16_i32_32 : i32 to vector<16x32xi32>
    %110 = arith.cmpi sge, %8, %109 : vector<16x32xi32>
    %c24_i32 = arith.constant 24 : i32
    %111 = vector.broadcast %c24_i32 : i32 to vector<16x32xi32>
    %112 = arith.cmpi slt, %8, %111 : vector<16x32xi32>
    %113 = arith.andi %110, %112 : vector<16x32xi1>
    %cst_33 = arith.constant 0xFF800000 : f32
    %114 = vector.broadcast %cst_33 : f32 to vector<16x32xf32>
    %115 = arith.select %113, %7, %114 : vector<16x32xi1>, vector<16x32xf32>
    %cst_34 = arith.constant dense<0xFF800000> : vector<16xf32>
    %116 = vector.multi_reduction <maximumf>, %115, %cst_34 [1] : vector<16x32xf32> to vector<16xf32>
    %117 = vector.shape_cast %116 : vector<16xf32> to vector<16x1xf32>
    %118 = vector.broadcast %117 : vector<16x1xf32> to vector<16x32xf32>
    %119 = arith.cmpf oeq, %115, %118 : vector<16x32xf32>
    %c32_i32_35 = arith.constant 32 : i32
    %120 = vector.broadcast %c32_i32_35 : i32 to vector<16x32xi32>
    %121 = arith.select %119, %8, %120 : vector<16x32xi1>, vector<16x32xi32>
    %cst_36 = arith.constant dense<2147483647> : vector<16xi32>
    %122 = vector.multi_reduction <minsi>, %121, %cst_36 [1] : vector<16x32xi32> to vector<16xi32>
    %123 = vector.shape_cast %122 : vector<16xi32> to vector<16x1xi32>
    %124 = vector.broadcast %123 : vector<16x1xi32> to vector<16x32xi32>
    %125 = arith.cmpi eq, %8, %124 : vector<16x32xi32>
    %cst_37 = arith.constant 0xFF800000 : f32
    %126 = vector.broadcast %cst_37 : f32 to vector<16x32xf32>
    %127 = arith.select %125, %126, %115 : vector<16x32xi1>, vector<16x32xf32>
    %cst_38 = arith.constant dense<0xFF800000> : vector<16xf32>
    %128 = vector.multi_reduction <maximumf>, %127, %cst_38 [1] : vector<16x32xf32> to vector<16xf32>
    %129 = vector.shape_cast %128 : vector<16xf32> to vector<16x1xf32>
    %130 = vector.broadcast %129 : vector<16x1xf32> to vector<16x32xf32>
    %131 = arith.cmpf oeq, %127, %130 : vector<16x32xf32>
    %c32_i32_39 = arith.constant 32 : i32
    %132 = vector.broadcast %c32_i32_39 : i32 to vector<16x32xi32>
    %133 = arith.select %131, %8, %132 : vector<16x32xi1>, vector<16x32xi32>
    %cst_40 = arith.constant dense<2147483647> : vector<16xi32>
    %134 = vector.multi_reduction <minsi>, %133, %cst_40 [1] : vector<16x32xi32> to vector<16xi32>
    %135 = vector.shape_cast %134 : vector<16xi32> to vector<16x1xi32>
    %c16_i32_41 = arith.constant 16 : i32
    %136 = vector.broadcast %c16_i32_41 : i32 to vector<16x1xi32>
    %137 = arith.subi %123, %136 : vector<16x1xi32>
    %c16_i32_42 = arith.constant 16 : i32
    %138 = vector.broadcast %c16_i32_42 : i32 to vector<16x1xi32>
    %139 = arith.subi %135, %138 : vector<16x1xi32>
    %c24_i32_43 = arith.constant 24 : i32
    %140 = vector.broadcast %c24_i32_43 : i32 to vector<16x32xi32>
    %141 = arith.cmpi sge, %8, %140 : vector<16x32xi32>
    %c32_i32_44 = arith.constant 32 : i32
    %142 = vector.broadcast %c32_i32_44 : i32 to vector<16x32xi32>
    %143 = arith.cmpi slt, %8, %142 : vector<16x32xi32>
    %144 = arith.andi %141, %143 : vector<16x32xi1>
    %cst_45 = arith.constant 0xFF800000 : f32
    %145 = vector.broadcast %cst_45 : f32 to vector<16x32xf32>
    %146 = arith.select %144, %7, %145 : vector<16x32xi1>, vector<16x32xf32>
    %cst_46 = arith.constant dense<0xFF800000> : vector<16xf32>
    %147 = vector.multi_reduction <maximumf>, %146, %cst_46 [1] : vector<16x32xf32> to vector<16xf32>
    %148 = vector.shape_cast %147 : vector<16xf32> to vector<16x1xf32>
    %149 = vector.broadcast %148 : vector<16x1xf32> to vector<16x32xf32>
    %150 = arith.cmpf oeq, %146, %149 : vector<16x32xf32>
    %c32_i32_47 = arith.constant 32 : i32
    %151 = vector.broadcast %c32_i32_47 : i32 to vector<16x32xi32>
    %152 = arith.select %150, %8, %151 : vector<16x32xi1>, vector<16x32xi32>
    %cst_48 = arith.constant dense<2147483647> : vector<16xi32>
    %153 = vector.multi_reduction <minsi>, %152, %cst_48 [1] : vector<16x32xi32> to vector<16xi32>
    %154 = vector.shape_cast %153 : vector<16xi32> to vector<16x1xi32>
    %155 = vector.broadcast %154 : vector<16x1xi32> to vector<16x32xi32>
    %156 = arith.cmpi eq, %8, %155 : vector<16x32xi32>
    %cst_49 = arith.constant 0xFF800000 : f32
    %157 = vector.broadcast %cst_49 : f32 to vector<16x32xf32>
    %158 = arith.select %156, %157, %146 : vector<16x32xi1>, vector<16x32xf32>
    %cst_50 = arith.constant dense<0xFF800000> : vector<16xf32>
    %159 = vector.multi_reduction <maximumf>, %158, %cst_50 [1] : vector<16x32xf32> to vector<16xf32>
    %160 = vector.shape_cast %159 : vector<16xf32> to vector<16x1xf32>
    %161 = vector.broadcast %160 : vector<16x1xf32> to vector<16x32xf32>
    %162 = arith.cmpf oeq, %158, %161 : vector<16x32xf32>
    %c32_i32_51 = arith.constant 32 : i32
    %163 = vector.broadcast %c32_i32_51 : i32 to vector<16x32xi32>
    %164 = arith.select %162, %8, %163 : vector<16x32xi1>, vector<16x32xi32>
    %cst_52 = arith.constant dense<2147483647> : vector<16xi32>
    %165 = vector.multi_reduction <minsi>, %164, %cst_52 [1] : vector<16x32xi32> to vector<16xi32>
    %166 = vector.shape_cast %165 : vector<16xi32> to vector<16x1xi32>
    %c24_i32_53 = arith.constant 24 : i32
    %167 = vector.broadcast %c24_i32_53 : i32 to vector<16x1xi32>
    %168 = arith.subi %154, %167 : vector<16x1xi32>
    %c24_i32_54 = arith.constant 24 : i32
    %169 = vector.broadcast %c24_i32_54 : i32 to vector<16x1xi32>
    %170 = arith.subi %166, %169 : vector<16x1xi32>
    %171 = arith.addf %117, %148 : vector<16x1xf32>
    %c8_i32_55 = arith.constant 8 : i32
    %172 = vector.broadcast %c8_i32_55 : i32 to vector<16x1xi32>
    %173 = arith.muli %137, %172 : vector<16x1xi32>
    %174 = arith.addi %173, %168 : vector<16x1xi32>
    %175 = arith.addf %117, %160 : vector<16x1xf32>
    %176 = arith.addf %129, %148 : vector<16x1xf32>
    %177 = arith.cmpf oge, %175, %176 : vector<16x1xf32>
    %178 = arith.addf %117, %160 : vector<16x1xf32>
    %179 = arith.addf %129, %148 : vector<16x1xf32>
    %180 = arith.select %177, %178, %179 : vector<16x1xi1>, vector<16x1xf32>
    %c8_i32_56 = arith.constant 8 : i32
    %181 = vector.broadcast %c8_i32_56 : i32 to vector<16x1xi32>
    %182 = arith.muli %137, %181 : vector<16x1xi32>
    %183 = arith.addi %182, %170 : vector<16x1xi32>
    %c8_i32_57 = arith.constant 8 : i32
    %184 = vector.broadcast %c8_i32_57 : i32 to vector<16x1xi32>
    %185 = arith.muli %139, %184 : vector<16x1xi32>
    %186 = arith.addi %185, %168 : vector<16x1xi32>
    %187 = arith.select %177, %183, %186 : vector<16x1xi1>, vector<16x1xi32>
    %188 = arith.subf %180, %171 : vector<16x1xf32>
    %189 = math.exp %188 : vector<16x1xf32>
    %cst_58 = arith.constant 1.000000e+00 : f32
    %190 = vector.broadcast %cst_58 : f32 to vector<16x1xf32>
    %191 = arith.addf %190, %189 : vector<16x1xf32>
    %cst_59 = arith.constant 1.000000e+00 : f32
    %192 = vector.broadcast %cst_59 : f32 to vector<16x1xf32>
    %193 = arith.divf %192, %191 : vector<16x1xf32>
    %194 = arith.mulf %189, %193 : vector<16x1xf32>
    %195 = vector.broadcast %174 : vector<16x1xi32> to vector<16x128xi32>
    %196 = arith.cmpi eq, %9, %195 : vector<16x128xi32>
    %197 = vector.broadcast %187 : vector<16x1xi32> to vector<16x128xi32>
    %198 = arith.cmpi eq, %9, %197 : vector<16x128xi32>
    %cst_60 = arith.constant 0.000000e+00 : f32
    %199 = vector.shape_cast %194 : vector<16x1xf32> to vector<16x1xf32>
    %200 = vector.broadcast %199 : vector<16x1xf32> to vector<16x128xf32>
    %201 = vector.broadcast %cst_60 : f32 to vector<16x128xf32>
    %202 = arith.select %198, %200, %201 : vector<16x128xi1>, vector<16x128xf32>
    %203 = vector.shape_cast %193 : vector<16x1xf32> to vector<16x1xf32>
    %204 = vector.broadcast %203 : vector<16x1xf32> to vector<16x128xf32>
    %205 = arith.select %196, %204, %202 : vector<16x128xi1>, vector<16x128xf32>
    %206 = arith.addf %108, %205 : vector<16x128xf32>
    %cst_61 = arith.constant dense<0.000000e+00> : vector<128xf32>
    %207 = vector.multi_reduction <add>, %206, %cst_61 [0] : vector<16x128xf32> to vector<128xf32>
    %208 = vector.shape_cast %207 : vector<128xf32> to vector<1x128xf32>
    %209 = arith.mulf %3, %3 : vector<16x128xf32>
    %210 = arith.mulf %3, %209 : vector<16x128xf32>
    %cst_62 = arith.constant 4.471500e-02 : f32
    %211 = vector.broadcast %cst_62 : f32 to vector<16x128xf32>
    %212 = arith.mulf %211, %210 : vector<16x128xf32>
    %213 = arith.addf %3, %212 : vector<16x128xf32>
    %cst_63 = arith.constant 0.797884583 : f32
    %214 = vector.broadcast %cst_63 : f32 to vector<16x128xf32>
    %215 = arith.mulf %214, %213 : vector<16x128xf32>
    %216 = math.tanh %215 : vector<16x128xf32>
    %cst_64 = arith.constant 1.000000e+00 : f32
    %217 = vector.broadcast %cst_64 : f32 to vector<16x128xf32>
    %218 = arith.addf %217, %216 : vector<16x128xf32>
    %cst_65 = arith.constant 5.000000e-01 : f32
    %219 = vector.broadcast %cst_65 : f32 to vector<16x128xf32>
    %220 = arith.mulf %219, %218 : vector<16x128xf32>
    %221 = arith.mulf %3, %220 : vector<16x128xf32>
    %222 = vector.broadcast %208 : vector<1x128xf32> to vector<16x128xf32>
    %223 = arith.mulf %221, %222 : vector<16x128xf32>
    %c0_66 = arith.constant 0 : index
    %c0_67 = arith.constant 0 : index
    %224 = vector.load %arg3[%c0_66, %c0_67] : memref<128x32xf32, #tpu.memory_space<vmem>>, vector<128x32xf32>
    %cst_68 = arith.constant dense<0.000000e+00> : vector<16x32xf32>
    %225 = tpu.matmul %223, %224, %cst_68 {dimension_numbers = #tpu.dot_dimension_numbers<[1], [0], [0], [1], [0, 0, 1, 1], [], []>} : vector<16x128xf32>, vector<128x32xf32>, vector<16x32xf32> -> vector<16x32xf32>
    %c0_69 = arith.constant 0 : index
    %c0_70 = arith.constant 0 : index
    %226 = vector.load %arg4[%c0_69, %c0_70] : memref<16x32xf32, #tpu.memory_space<vmem>>, vector<16x32xf32>
    tpu.vector_store %arg4[%c0_69, %c0_70], %225 {strides = array<i32>} : memref<16x32xf32, #tpu.memory_space<vmem>>, vector<16x32xf32>,
    return
  }
}

</mosaic_0001>

<bundles_post_ra>
// kernel: _forward_impl.1
= control target key start
LH: loop header
LB: loop body
LE: loop exit
PB: predicated region body
PF: predicated region fallthrough
CT: control target
= control target key end

     0   :  { %s1461_s0 = inlined_call_operand.vmem [shape: f32[16,32], index: 0, kind: input, shape index: {}]   ;;  %s1462_s1 = inlined_call_operand.vmem [shape: f32[32,160], index: 1, kind: input, shape index: {}]   ;;  %s1463_s2 = inlined_call_operand.vmem [shape: f32[1,32], index: 2, kind: input, shape index: {}]   ;;  %s1464_s3 = inlined_call_operand.vmem [shape: f32[128,32], index: 3, kind: input, shape index: {}]   ;;  %s1465_s4 = inlined_call_operand.hbm [shape: f32[16,32], index: 4, kind: output, shape index: {}]  }
   0x1   :  { %v27_v0 = vld [vmem:[%s1462_s1 + $0x38] sm:$0xff]  ;;  %v25_v1 = vld [vmem:[%s1462_s1 + $0x28] sm:$0xff] }
   0x2   :  { %70 = vmatpush.msra.mxu1 %v27_v0  ;;  %v23_v2 = vld [vmem:[%s1462_s1 + $0x18] sm:$0xff] }
   0x3   :  { %9 = vsyncpa [#allocation3], 0  ;;  %v21_v3 = vld [vmem:[%s1462_s1 + $0x8] sm:$0xff]  ;;  %v812_v4 = vld [vmem:[%s1461_s0] sm:$0xff]  ;;  %vm28_vm0 = vcmask 261120   ;;  %v87_v6 = vlaneseq  ;;  %s675_s14 = sshll.u32 %s1465_s4, 4  ;;  %s676_s14 = int_to_ptr.hbm [resolvable:$true] %s675_s14 }
   0x4   :  { %71 = vmatpush.msra.mxu1 %v25_v1  ;;  %v819_v5 = vld [vmem:[%s1461_s0 + $0x8] sm:$0xff]  ;;  %v722_v8 = vld [vmem:[%s1463_s2] ss:$0 sm:$0xff]  ;;  %s770_s15 = smov 128   ;;  %s771_s16 = smov 8  }
   0x5   :  { %v823_v7 = vand.u32 127, %v87_v6 }
   0x6   :  { %72 = vmatpush.msra.mxu1 %v23_v2 }
   0x7   :  { %vm343_vm1 = vcmp.ge.s32.totalorder %v823_v7, 16  ;;  %vm344_vm2 = vcmp.lt.s32.totalorder %v823_v7, 24  ;;  %vm178_vm3 = vcmp.ge.s32.totalorder %v823_v7, 8  ;;  %vm179_vm4 = vcmp.lt.s32.totalorder %v823_v7, 16 }
   0x8   :  { %73 = vmatpush.msra.mxu1 %v21_v3  ;;  %vm832_vm5 = vmand %vm343_vm1, %vm344_vm2  ;;  %vm90_vm7 = vcmp.lt.s32.totalorder %v823_v7, 8  ;;  %vm436_vm8 = vcmp.ge.s32.totalorder %v823_v7, 24  ;;  %vm437_vm9 = vcmp.lt.s32.totalorder %v823_v7, 32 }
   0x9   :  { %689 = vmatmul.msk.f32.vlgmr.msra.gmra.mxu1 %vm28_vm0, %v812_v4  ;;  %vm836_vm6 = vmand %vm178_vm3, %vm179_vm4 }
   0xa   :  { %vm438_vm10 = vmand %vm436_vm8, %vm437_vm9 }
  0x11   :  { %690 = vmatmul.msk.f32.gmra.mxu1 %vm28_vm0, %v819_v5 }
  0x86   :  { %v75_v10 = vpop.f32.mrf.mxu1 }
  0x87   :  { %v85_v12 = vadd.f32 %v722_v8, %v75_v10 }
  0x89   :  { %v843_v13 = vsel %vm832_vm5, %v85_v12, -inf  ;;  %v847_v14 = vsel %vm836_vm6, %v85_v12, -inf  ;;  %v851_v15 = vsel %vm90_vm7, %v85_v12, -inf  ;;  %v879_v27 = vsel %vm438_vm10, %v85_v12, -inf }
  0x8a   :  { %v348_v16 = vsel %vm28_vm0, %v843_v13, -inf  ;;  %v183_v17 = vsel %vm28_vm0, %v847_v14, -inf  ;;  %v94_v18 = vsel %vm28_vm0, %v851_v15, -inf  ;;  %v441_v29 = vsel %vm28_vm0, %v879_v27, -inf }
  0x8b   :  { %349 = vmax.xlane.f32.xlu0 %v348_v16  ;;  %184 = vmax.xlane.f32.xlu2 %v183_v17 }
  0x8c   :  { %95 = vmax.xlane.f32.xlu1 %v94_v18 }
  0x8e   :  { %v78_v19 = vpop.f32.mrf.mxu1 }
  0x8f   :  { %v86_v20 = vadd.f32 %v722_v8, %v78_v19 }
  0x91   :  { %v862_v21 = vsel %vm832_vm5, %v86_v20, -inf  ;;  %v866_v22 = vsel %vm836_vm6, %v86_v20, -inf  ;;  %v870_v23 = vsel %vm90_vm7, %v86_v20, -inf  ;;  %v881_v28 = vsel %vm438_vm10, %v86_v20, -inf }
  0x92   :  { %v351_v24 = vsel %vm28_vm0, %v862_v21, -inf  ;;  %v186_v25 = vsel %vm28_vm0, %v866_v22, -inf  ;;  %v97_v26 = vsel %vm28_vm0, %v870_v23, -inf  ;;  %v444_v30 = vsel %vm28_vm0, %v881_v28, -inf }
  0x93   :  { %352 = vmax.xlane.f32.xlu0 %v351_v24  ;;  %187 = vmax.xlane.f32.xlu2 %v186_v25 }
  0x94   :  { %98 = vmax.xlane.f32.xlu1 %v97_v26 }
  0x9b   :  { %442 = vmax.xlane.f32.xlu0 %v441_v29 }
  0x9c   :  { %445 = vmax.xlane.f32.xlu1 %v444_v30 }
  0xfe   :  { %v887_v31 = vpop.xlane.xlu0 %349  ;;  %v889_v32 = vpop.xlane.xlu2 %184 }
  0xff   :  { %vm354_vm11 = vcmp.eq.f32.partialorder %v843_v13, %v887_v31  ;;  %vm189_vm12 = vcmp.eq.f32.partialorder %v847_v14, %v889_v32  ;;  %v895_v33 = vpop.xlane.xlu1 %95 }
 0x100   :  { %vm100_vm13 = vcmp.eq.f32.partialorder %v851_v15, %v895_v33  ;;  %v191_v34 = vsel %vm189_vm12, %v823_v7, 32  ;;  %v356_v35 = vsel %vm354_vm11, %v823_v7, 32 }
 0x101   :  { %v193_v36 = vsel %vm28_vm0, %v191_v34, 2147483647  ;;  %v358_v37 = vsel %vm28_vm0, %v356_v35, 2147483647  ;;  %v102_v38 = vsel %vm100_vm13, %v823_v7, 32 }
 0x102   :  { %v195_v39 = vshra.s32 %v193_v36, 16  ;;  %v360_v40 = vshra.s32 %v358_v37, 16  ;;  %v104_v41 = vsel %vm28_vm0, %v102_v38, 2147483647  ;;  %v359_v10 = vand.u32 65535, %v358_v37 }
 0x103   :  { %v106_v42 = vshra.s32 %v104_v41, 16  ;;  %v194_v11 = vand.u32 65535, %v193_v36  ;;  %v105_v12 = vand.u32 65535, %v104_v41 }
 0x104   :  { %v197_v43 = vcvt.s32.f32 %v195_v39  ;;  %v362_v44 = vcvt.s32.f32 %v360_v40  ;;  %v361_v18 = vcvt.s32.f32 %v359_v10 }
 0x105   :  { %v108_v45 = vcvt.s32.f32 %v106_v42  ;;  %v196_v19 = vcvt.s32.f32 %v194_v11  ;;  %v107_v24 = vcvt.s32.f32 %v105_v12 }
 0x106   :  { %198 = vmin.xlane.f32.xlu0 %v197_v43  ;;  %v905_v46 = vpop.xlane.xlu0 %352  ;;  %363 = vmin.xlane.f32.xlu2 %v362_v44  ;;  %v907_v47 = vpop.xlane.xlu2 %187 }
 0x107   :  { %vm355_vm14 = vcmp.eq.f32.partialorder %v862_v21, %v905_v46  ;;  %vm190_vm15 = vcmp.eq.f32.partialorder %v866_v22, %v907_v47  ;;  %109 = vmin.xlane.f32.xlu1 %v108_v45  ;;  %v913_v48 = vpop.xlane.xlu1 %98 }
 0x108   :  { %vm101_vm1 = vcmp.eq.f32.partialorder %v870_v23, %v913_v48  ;;  %v357_v49 = vsel %vm355_vm14, %v823_v7, 32  ;;  %v192_v50 = vsel %vm190_vm15, %v823_v7, 32 }
 0x109   :  { %v373_v51 = vsel %vm28_vm0, %v357_v49, 2147483647  ;;  %v208_v52 = vsel %vm28_vm0, %v192_v50, 2147483647  ;;  %v103_v53 = vsel %vm101_vm1, %v823_v7, 32 }
 0x10a   :  { %v375_v54 = vshra.s32 %v373_v51, 16  ;;  %v210_v55 = vshra.s32 %v208_v52, 16  ;;  %v119_v56 = vsel %vm28_vm0, %v103_v53, 2147483647  ;;  %v374_v30 = vand.u32 65535, %v373_v51 }
 0x10b   :  { %v121_v57 = vshra.s32 %v119_v56, 16  ;;  %v120_v34 = vand.u32 65535, %v119_v56  ;;  %v209_v35 = vand.u32 65535, %v208_v52 }
 0x10c   :  { %v377_v58 = vcvt.s32.f32 %v375_v54  ;;  %v212_v59 = vcvt.s32.f32 %v210_v55  ;;  %v376_v37 = vcvt.s32.f32 %v374_v30 }
 0x10d   :  { %v123_v60 = vcvt.s32.f32 %v121_v57  ;;  %v122_v40 = vcvt.s32.f32 %v120_v34  ;;  %v211_v42 = vcvt.s32.f32 %v209_v35 }
 0x10e   :  { %378 = vmin.xlane.f32.xlu0 %v377_v58  ;;  %v923_v61 = vpop.xlane.xlu0 %442 }
 0x10f   :  { %vm447_vm2 = vcmp.eq.f32.partialorder %v879_v27, %v923_v61  ;;  %213 = vmin.xlane.f32.xlu1 %v212_v59  ;;  %124 = vmin.xlane.f32.xlu2 %v123_v60  ;;  %v927_v62 = vpop.xlane.xlu1 %445 }
 0x110   :  { %vm448_vm3 = vcmp.eq.f32.partialorder %v881_v28, %v927_v62  ;;  %v449_v63 = vsel %vm447_vm2, %v823_v7, 32 }
 0x111   :  { %v451_v0 = vsel %vm28_vm0, %v449_v63, 2147483647  ;;  %v450_v1 = vsel %vm448_vm3, %v823_v7, 32 }
 0x112   :  { %v453_v2 = vshra.s32 %v451_v0, 16  ;;  %v466_v3 = vsel %vm28_vm0, %v450_v1, 2147483647 }
 0x113   :  { %v468_v6 = vshra.s32 %v466_v3, 16  ;;  %v467_v49 = vand.u32 65535, %v466_v3 }
 0x114   :  { %v455_v8 = vcvt.s32.f32 %v453_v2 }
 0x115   :  { %v470_v9 = vcvt.s32.f32 %v468_v6  ;;  %v469_v53 = vcvt.s32.f32 %v467_v49 }
 0x117   :  { %456 = vmin.xlane.f32.xlu2 %v455_v8  ;;  %471 = vmin.xlane.f32.xlu0 %v470_v9 }
 0x179   :  { %v199_v16 = vpop.xlane.xlu0 %198  ;;  %v364_v17 = vpop.xlane.xlu2 %363 }
 0x17a   :  { %v110_v20 = vpop.xlane.xlu1 %109  ;;  %vm365_vm4 = vcmp.eq.f32.partialorder %v362_v44, %v364_v17  ;;  %vm200_vm5 = vcmp.eq.f32.partialorder %v197_v43, %v199_v16  ;;  %v205_v56 = vcvt.f32.s32 %v199_v16  ;;  %v370_v57 = vcvt.f32.s32 %v364_v17 }
 0x17b   :  { %v366_v25 = vsel %vm365_vm4, %v361_v18, inf  ;;  %v201_v26 = vsel %vm200_vm5, %v196_v19, inf  ;;  %vm111_vm6 = vcmp.eq.f32.partialorder %v108_v45, %v110_v20  ;;  %v452_v45 = vand.u32 65535, %v451_v0 }
 0x17c   :  { %367 = vmin.xlane.f32.xlu1 %v366_v25  ;;  %202 = vmin.xlane.f32.xlu2 %v201_v26  ;;  %v112_v29 = vsel %vm111_vm6, %v107_v24, inf  ;;  %v206_v63 = vshll.u32 %v205_v56, 16  ;;  %v371_v0 = vshll.u32 %v370_v57, 16 }
 0x17d   :  { %113 = vmin.xlane.f32.xlu0 %v112_v29  ;;  %v454_v52 = vcvt.s32.f32 %v452_v45 }
 0x181   :  { %v379_v36 = vpop.xlane.xlu0 %378 }
 0x182   :  { %v125_v38 = vpop.xlane.xlu2 %124  ;;  %v935_v39 = vpop.xlane.xlu1 %213  ;;  %vm380_vm7 = vcmp.eq.f32.partialorder %v377_v58, %v379_v36  ;;  %v116_v58 = vcvt.f32.s32 %v110_v20  ;;  %v385_v12 = vcvt.f32.s32 %v379_v36 }
 0x183   :  { %v381_v41 = vsel %vm380_vm7, %v376_v37, inf  ;;  %vm126_vm8 = vcmp.eq.f32.partialorder %v123_v60, %v125_v38  ;;  %vm215_vm9 = vcmp.eq.f32.partialorder %v212_v59, %v935_v39  ;;  %v131_v18 = vcvt.f32.s32 %v125_v38 }
 0x184   :  { %382 = vmin.xlane.f32.xlu2 %v381_v41  ;;  %v127_v43 = vsel %vm126_vm8, %v122_v40, inf  ;;  %v216_v44 = vsel %vm215_vm9, %v211_v42, inf  ;;  %v117_v6 = vshll.u32 %v116_v58, 16  ;;  %v220_v24 = vcvt.f32.s32 %v935_v39 }
 0x185   :  { %128 = vmin.xlane.f32.xlu1 %v127_v43  ;;  %217 = vmin.xlane.f32.xlu0 %v216_v44  ;;  %v386_v34 = vshll.u32 %v385_v12, 16 }
 0x186   :  { %v221_v39 = vshll.u32 %v220_v24, 16 }
 0x18a   :  { %v938_v50 = vpop.xlane.xlu2 %456  ;;  %v940_v51 = vpop.xlane.xlu0 %471 }
 0x18b   :  { %vm458_vm10 = vcmp.eq.f32.partialorder %v455_v8, %v938_v50  ;;  %vm473_vm11 = vcmp.eq.f32.partialorder %v470_v9, %v940_v51  ;;  %v463_v43 = vcvt.f32.s32 %v938_v50  ;;  %v478_v45 = vcvt.f32.s32 %v940_v51 }
 0x18c   :  { %v459_v54 = vsel %vm458_vm10, %v454_v52, inf  ;;  %v474_v55 = vsel %vm473_vm11, %v469_v53, inf }
 0x18d   :  { %460 = vmin.xlane.f32.xlu1 %v459_v54  ;;  %475 = vmin.xlane.f32.xlu2 %v474_v55 }
 0x1ef   :  { %v203_v59 = vpop.xlane.xlu2 %202  ;;  %v368_v60 = vpop.xlane.xlu1 %367 }
 0x1f0   :  { %v204_v1 = vcvt.f32.s32 %v203_v59  ;;  %v114_v2 = vpop.xlane.xlu0 %113  ;;  %v369_v3 = vcvt.f32.s32 %v368_v60 }
 0x1f1   :  { %v115_v10 = vcvt.f32.s32 %v114_v2 }
 0x1f2   :  { %v207_v11 = vadd.s32 %v206_v63, %v204_v1  ;;  %v372_v8 = vadd.s32 %v371_v0, %v369_v3  ;;  %v479_v63 = vshll.u32 %v478_v45, 16 }
 0x1f3   :  { %v944_v9 = vadd.s32 %v117_v6, %v115_v10 }
 0x1f4   :  { %v946_v19 = vadd.s32 4294967288, %v207_v11  ;;  %vm223_vm12 = vcmp.eq.s32.totalorder %v823_v7, %v207_v11  ;;  %vm388_vm13 = vcmp.eq.s32.totalorder %v823_v7, %v372_v8  ;;  %v990_v50 = vadd.s32 4294967280, %v372_v8 }
 0x1f5   :  { %v273_v16 = vmul.u32 8, %v944_v9  ;;  %v952_v17 = vsel %vm223_vm12, -inf, %v847_v14  ;;  %vm134_vm14 = vcmp.eq.s32.totalorder %v823_v7, %v944_v9  ;;  %v957_v20 = vsel %vm388_vm13, -inf, %v843_v13 }
 0x1f6   :  { %v227_v25 = vsel %vm28_vm0, %v952_v17, -inf  ;;  %v963_v26 = vsel %vm134_vm14, -inf, %v851_v15  ;;  %v392_v29 = vsel %vm28_vm0, %v957_v20, -inf  ;;  %v132_v15 = vshll.u32 %v131_v18, 16 }
 0x1f7   :  { %v970_v14 = vadd.s32 %v946_v19, %v273_v16  ;;  %v383_v30 = vpop.xlane.xlu2 %382  ;;  %228 = vmax.xlane.f32.xlu1 %v227_v25  ;;  %v138_v13 = vsel %vm28_vm0, %v963_v26, -inf  ;;  %393 = vmax.xlane.f32.xlu0 %v392_v29  ;;  %v1466_v3 = vmul.u32 8, %v990_v50 }
 0x1f8   :  { %v384_v35 = vcvt.f32.s32 %v383_v30  ;;  %139 = vmax.xlane.f32.xlu2 %v138_v13  ;;  %v129_v36 = vpop.xlane.xlu1 %128  ;;  %v218_v37 = vpop.xlane.xlu0 %217 }
 0x1f9   :  { %v130_v38 = vcvt.f32.s32 %v129_v36  ;;  %v219_v41 = vcvt.f32.s32 %v218_v37 }
 0x1fa   :  { %v387_v40 = vadd.s32 %v386_v34, %v384_v35 }
 0x1fb   :  { %v974_v42 = vadd.s32 %v132_v15, %v130_v38  ;;  %v222_v44 = vadd.s32 %v221_v39, %v219_v41  ;;  %v26_v39 = vld [vmem:[%s1462_s1 + $0x30] sm:$0xff] }
 0x1fc   :  { %vm389_vm15 = vcmp.eq.s32.totalorder %v823_v7, %v387_v40  ;;  %47 = vmatpush.msra.mxu0 %v26_v39 }
 0x1fd   :  { %v274_v49 = vmul.u32 8, %v974_v42  ;;  %v981_v52 = vsel %vm389_vm15, -inf, %v862_v21  ;;  %vm135_vm1 = vcmp.eq.s32.totalorder %v823_v7, %v974_v42  ;;  %v985_v53 = vadd.s32 4294967288, %v222_v44 }
 0x1fe   :  { %v395_v54 = vsel %vm28_vm0, %v981_v52, -inf  ;;  %vm224_vm2 = vcmp.eq.s32.totalorder %v823_v7, %v222_v44  ;;  %v996_v55 = vsel %vm135_vm1, -inf, %v870_v23  ;;  %v998_v21 = vadd.s32 4294967280, %v387_v40  ;;  %v24_v40 = vld [vmem:[%s1462_s1 + $0x20] sm:$0xff] }
 0x1ff   :  { %396 = vmax.xlane.f32.xlu1 %v395_v54  ;;  %v993_v51 = vsel %vm224_vm2, -inf, %v866_v22  ;;  %v1003_v56 = vadd.s32 %v985_v53, %v274_v49  ;;  %v141_v59 = vsel %vm28_vm0, %v996_v55, -inf  ;;  %v464_v22 = vshll.u32 %v463_v43, 16  ;;  %v22_v54 = vld [vmem:[%s1462_s1 + $0x10] sm:$0xff]  ;;  %48 = vmatpush.msra.mxu0 %v24_v40 }
 0x200   :  { %v476_v57 = vpop.xlane.xlu2 %475  ;;  %v230_v58 = vsel %vm28_vm0, %v993_v51, -inf  ;;  %v461_v60 = vpop.xlane.xlu1 %460  ;;  %142 = vmax.xlane.f32.xlu0 %v141_v59  ;;  %v1467_v6 = vmul.u32 8, %v998_v21  ;;  %v20_v59 = vld [vmem:[%s1462_s1] sm:$0xff] }
 0x201   :  { %v477_v0 = vcvt.f32.s32 %v476_v57  ;;  %231 = vmax.xlane.f32.xlu2 %v230_v58  ;;  %v462_v23 = vcvt.f32.s32 %v461_v60  ;;  %49 = vmatpush.msra.mxu0 %v22_v54 }
 0x203   :  { %v480_v1 = vadd.s32 %v479_v63, %v477_v0  ;;  %v465_v2 = vadd.s32 %v464_v22, %v462_v23  ;;  %50 = vmatpush.msra.mxu0 %v20_v59 }
 0x204   :  { %687 = vmatmul.msk.f32.vlgmr.msra.gmra.mxu0 %vm28_vm0, %v812_v4 }
 0x205   :  { %v1011_v10 = vadd.s32 4294967272, %v480_v1  ;;  %v1013_v11 = vadd.s32 4294967272, %v465_v2  ;;  %vm482_vm3 = vcmp.eq.s32.totalorder %v823_v7, %v480_v1  ;;  %vm481_vm4 = vcmp.eq.s32.totalorder %v823_v7, %v465_v2 }
 0x206   :  { %v1018_v8 = vsel %vm482_vm3, -inf, %v881_v28  ;;  %v1021_v12 = vsel %vm481_vm4, -inf, %v879_v27 }
 0x207   :  { %v1026_v18 = vadd.s32 %v1011_v10, %v1467_v6  ;;  %v1031_v24 = vadd.s32 %v1013_v11, %v1466_v3  ;;  %v488_v25 = vsel %vm28_vm0, %v1018_v8, -inf  ;;  %v485_v28 = vsel %vm28_vm0, %v1021_v12, -inf }
 0x208   :  { %489 = vmax.xlane.f32.xlu1 %v488_v25  ;;  %486 = vmax.xlane.f32.xlu0 %v485_v28 }
 0x20c   :  { %688 = vmatmul.msk.f32.gmra.mxu0 %vm28_vm0, %v819_v5 }
 0x26a   :  { %v1037_v27 = vpop.xlane.xlu0 %393  ;;  %v229_v29 = vpop.xlane.xlu1 %228 }
 0x26b   :  { %v140_v30 = vpop.xlane.xlu2 %139  ;;  %vm398_vm5 = vcmp.eq.f32.partialorder %v957_v20, %v1037_v27  ;;  %vm233_vm6 = vcmp.eq.f32.partialorder %v952_v17, %v229_v29  ;;  %v1043_v13 = vadd.f32 %v229_v29, %v895_v33 }
 0x26c   :  { %vm144_vm7 = vcmp.eq.f32.partialorder %v963_v26, %v140_v30  ;;  %v1047_v34 = vadd.f32 %v889_v32, %v140_v30  ;;  %v400_v35 = vsel %vm398_vm5, %v823_v7, 32  ;;  %v235_v36 = vsel %vm233_vm6, %v823_v7, 32 }
 0x26d   :  { %v146_v15 = vsel %vm144_vm7, %v823_v7, 32  ;;  %v1053_v37 = vsel %vm28_vm0, %v400_v35, 2147483647  ;;  %v1056_v20 = vsel %vm28_vm0, %v235_v36, 2147483647 }
 0x26e   :  { %vm281_vm8 = vcmp.ge.f32.partialorder %v1043_v13, %v1047_v34  ;;  %v1061_v17 = vsel %vm28_vm0, %v146_v15, 2147483647  ;;  %v404_v26 = vshra.s32 %v1053_v37, 16  ;;  %v239_v38 = vshra.s32 %v1056_v20, 16 }
 0x26f   :  { %v1076_v41 = vsel %vm281_vm8, %v1043_v13, %v1047_v34  ;;  %v150_v43 = vshra.s32 %v1061_v17, 16  ;;  %v149_v59 = vand.u32 65535, %v1061_v17 }
 0x270   :  { %v406_v44 = vcvt.s32.f32 %v404_v26  ;;  %v241_v45 = vcvt.s32.f32 %v239_v38 }
 0x271   :  { %v152_v57 = vcvt.s32.f32 %v150_v43 }
 0x272   :  { %407 = vmin.xlane.f32.xlu2 %v406_v44  ;;  %242 = vmin.xlane.f32.xlu0 %v241_v45  ;;  %v1082_v58 = vpop.xlane.xlu1 %396 }
 0x273   :  { %153 = vmin.xlane.f32.xlu1 %v152_v57  ;;  %vm399_vm9 = vcmp.eq.f32.partialorder %v981_v52, %v1082_v58  ;;  %v1091_v22 = vpop.xlane.xlu0 %142 }
 0x274   :  { %v1089_v60 = vpop.xlane.xlu2 %231  ;;  %v401_v63 = vsel %vm399_vm9, %v823_v7, 32  ;;  %vm145_vm11 = vcmp.eq.f32.partialorder %v996_v55, %v1091_v22 }
 0x275   :  { %vm234_vm10 = vcmp.eq.f32.partialorder %v993_v51, %v1089_v60  ;;  %v147_v23 = vsel %vm145_vm11, %v823_v7, 32  ;;  %v417_v52 = vsel %vm28_vm0, %v401_v63, 2147483647 }
 0x276   :  { %v236_v0 = vsel %vm234_vm10, %v823_v7, 32  ;;  %v163_v2 = vsel %vm28_vm0, %v147_v23, 2147483647  ;;  %v419_v25 = vshra.s32 %v417_v52, 16 }
 0x277   :  { %v252_v1 = vsel %vm28_vm0, %v236_v0, 2147483647  ;;  %v165_v51 = vshra.s32 %v163_v2, 16  ;;  %v164_v17 = vand.u32 65535, %v163_v2 }
 0x278   :  { %v254_v28 = vshra.s32 %v252_v1, 16  ;;  %v421_v29 = vcvt.s32.f32 %v419_v25 }
 0x279   :  { %v167_v55 = vcvt.s32.f32 %v165_v51 }
 0x27a   :  { %v256_v30 = vcvt.s32.f32 %v254_v28  ;;  %422 = vmin.xlane.f32.xlu0 %v421_v29  ;;  %v151_v28 = vcvt.s32.f32 %v149_v59 }
 0x27b   :  { %v1105_v35 = vpop.xlane.xlu1 %489  ;;  %168 = vmin.xlane.f32.xlu2 %v167_v55  ;;  %v1107_v36 = vpop.xlane.xlu0 %486 }
 0x27c   :  { %257 = vmin.xlane.f32.xlu1 %v256_v30  ;;  %vm492_vm12 = vcmp.eq.f32.partialorder %v1018_v8, %v1105_v35  ;;  %vm491_vm13 = vcmp.eq.f32.partialorder %v1021_v12, %v1107_v36  ;;  %v403_v8 = vand.u32 65535, %v1053_v37  ;;  %v238_v12 = vand.u32 65535, %v1056_v20 }
 0x27d   :  { %v494_v4 = vsel %vm492_vm12, %v823_v7, 32  ;;  %v493_v15 = vsel %vm491_vm13, %v823_v7, 32  ;;  %v418_v20 = vand.u32 65535, %v417_v52 }
 0x27e   :  { %v510_v26 = vsel %vm28_vm0, %v494_v4, 2147483647  ;;  %v495_v38 = vsel %vm28_vm0, %v493_v15, 2147483647  ;;  %v405_v23 = vcvt.s32.f32 %v403_v8  ;;  %v240_v5 = vcvt.s32.f32 %v238_v12 }
 0x27f   :  { %v512_v39 = vshra.s32 %v510_v26, 16  ;;  %v497_v40 = vshra.s32 %v495_v38, 16  ;;  %v253_v15 = vand.u32 65535, %v252_v1  ;;  %v511_v1 = vand.u32 65535, %v510_v26 }
 0x280   :  { %v496_v2 = vand.u32 65535, %v495_v38  ;;  %v1150_v26 = vadd.f32 %v1089_v60, %v913_v48  ;;  %v1154_v38 = vadd.f32 %v907_v47, %v1091_v22  ;;  %v1168_v60 = vadd.f32 %v1105_v35, %v905_v46 }
 0x281   :  { %v514_v43 = vcvt.s32.f32 %v512_v39  ;;  %v499_v54 = vcvt.s32.f32 %v497_v40  ;;  %v420_v40 = vcvt.s32.f32 %v418_v20  ;;  %v255_v12 = vcvt.s32.f32 %v253_v15 }
 0x282   :  { %vm282_vm7 = vcmp.ge.f32.partialorder %v1150_v26, %v1154_v38 }
 0x283   :  { %515 = vmin.xlane.f32.xlu0 %v514_v43  ;;  %500 = vmin.xlane.f32.xlu2 %v499_v54 }
 0x2e5   :  { %v1122_v63 = vpop.xlane.xlu2 %407  ;;  %v1124_v0 = vpop.xlane.xlu0 %242 }
 0x2e6   :  { %v1126_v25 = vpop.xlane.xlu1 %153  ;;  %vm409_vm14 = vcmp.eq.f32.partialorder %v406_v44, %v1122_v63  ;;  %vm244_vm15 = vcmp.eq.f32.partialorder %v241_v45, %v1124_v0  ;;  %v166_v45 = vcvt.s32.f32 %v164_v17  ;;  %v529_v17 = vadd.f32 %v923_v61, %v887_v31 }
 0x2e7   :  { %v410_v51 = vsel %vm409_vm14, %v405_v23, inf  ;;  %v245_v4 = vsel %vm244_vm15, %v240_v5, inf  ;;  %vm155_vm1 = vcmp.eq.f32.partialorder %v152_v57, %v1126_v25  ;;  %v513_v5 = vcvt.s32.f32 %v511_v1 }
 0x2e8   :  { %411 = vmin.xlane.f32.xlu1 %v410_v51  ;;  %246 = vmin.xlane.f32.xlu2 %v245_v4  ;;  %v156_v37 = vsel %vm155_vm1, %v151_v28, inf  ;;  %v498_v51 = vcvt.s32.f32 %v496_v2  ;;  %v643_v2 = vld [vmem:[%s1464_s3 + $0x78] sm:$0xff]  ;;  %vm333_vm1 = vcmp.eq.s32.totalorder %v823_v7, %v970_v14 }
 0x2e9   :  { %157 = vmin.xlane.f32.xlu0 %v156_v37  ;;  %644 = vmatpush.msra.mxu2 %v643_v2 }
 0x2ea   :  { %703 = vmatpush.msra.mxu3 %v643_v2  ;;  %v637_v2 = vld [vmem:[%s1464_s3 + $0x48] sm:$0xff] }
 0x2ed   :  { %v1131_v39 = vpop.xlane.xlu0 %422 }
 0x2ee   :  { %v1133_v8 = vpop.xlane.xlu2 %168  ;;  %vm424_vm2 = vcmp.eq.f32.partialorder %v421_v29, %v1131_v39 }
 0x2ef   :  { %v1135_v44 = vpop.xlane.xlu1 %257  ;;  %vm170_vm3 = vcmp.eq.f32.partialorder %v167_v55, %v1133_v8  ;;  %v425_v57 = vsel %vm424_vm2, %v420_v40, inf }
 0x2f0   :  { %v171_v59 = vsel %vm170_vm3, %v166_v45, inf  ;;  %426 = vmin.xlane.f32.xlu2 %v425_v57  ;;  %vm259_vm4 = vcmp.eq.f32.partialorder %v256_v30, %v1135_v44  ;;  %v271_v30 = vadd.f32 %v889_v32, %v895_v33  ;;  %v284_v32 = vsel %vm282_vm7, %v1150_v26, %v1154_v38 }
 0x2f1   :  { %172 = vmin.xlane.f32.xlu1 %v171_v59  ;;  %v260_v52 = vsel %vm259_vm4, %v255_v12, inf  ;;  %v272_v33 = vadd.f32 %v907_v47, %v913_v48  ;;  %v1182_v47 = vadd.f32 %v923_v61, %v1037_v27 }
 0x2f2   :  { %261 = vmin.xlane.f32.xlu0 %v260_v52  ;;  %v293_v4 = vsub.f32 %v1076_v41, %v271_v30  ;;  %v1172_v41 = vadd.f32 %v927_v62, %v1082_v58  ;;  %v641_v30 = vld [vmem:[%s1464_s3 + $0x68] sm:$0xff] }
 0x2f3   :  { %v294_v22 = vsub.f32 %v284_v32, %v272_v33 }
 0x2f4   :  { %vm540_vm9 = vcmp.ge.f32.partialorder %v1168_v60, %v1172_v41 }
 0x2f5   :  { %v297_v48 = vmul.f32 1.442695, %v294_v22  ;;  %v542_v35 = vsel %vm540_vm9, %v1168_v60, %v1172_v41  ;;  %v640_v22 = vld [vmem:[%s1464_s3 + $0x60] sm:$0xff] }
 0x2f6   :  { %v1140_v23 = vpop.xlane.xlu0 %515  ;;  %v1142_v28 = vpop.xlane.xlu2 %500 }
 0x2f7   :  { %vm517_vm5 = vcmp.eq.f32.partialorder %v514_v43, %v1140_v23  ;;  %vm502_vm6 = vcmp.eq.f32.partialorder %v499_v54, %v1142_v28  ;;  %v295_v43 = vmul.f32 1.442695, %v293_v4  ;;  %v1176_v54 = vadd.f32 %v1107_v36, %v887_v31  ;;  %v1241_v4 = vpop.f32.mrf.mxu0 }
 0x2f8   :  { %v518_v29 = vsel %vm517_vm5, %v513_v5, inf  ;;  %v503_v55 = vsel %vm502_vm6, %v498_v51, inf  ;;  %v530_v36 = vadd.f32 %v927_v62, %v905_v46  ;;  %v507_v14 = vcvt.f32.s32 %v1142_v28 }
 0x2f9   :  { %519 = vmin.xlane.f32.xlu2 %v518_v29  ;;  %504 = vmin.xlane.f32.xlu1 %v503_v55  ;;  %723 = vpow2.f32 %v295_v43  ;;  %vm539_vm10 = vcmp.ge.f32.partialorder %v1176_v54, %v1182_v47  ;;  %v642_v55 = vld [vmem:[%s1464_s3 + $0x70] sm:$0xff] }
 0x2fa   :  { %725 = vpow2.f32 %v297_v48  ;;  %v552_v37 = vsub.f32 %v542_v35, %v530_v36  ;;  %v541_v20 = vsel %vm539_vm10, %v1176_v54, %v1182_v47  ;;  %645 = vmatpush.msra.mxu2 %v642_v55  ;;  %704 = vmatpush.msra.mxu3 %v642_v55  ;;  %v414_v35 = vcvt.f32.s32 %v1122_v63  ;;  %v636_v63 = vld [vmem:[%s1464_s3 + $0x40] sm:$0xff] }
 0x2fb   :  { %v551_v15 = vsub.f32 %v541_v20, %v529_v17  ;;  %v249_v36 = vcvt.f32.s32 %v1124_v0  ;;  %v160_v20 = vcvt.f32.s32 %v1126_v25 }
 0x2fc   :  { %v555_v40 = vmul.f32 1.442695, %v552_v37  ;;  %646 = vmatpush.msra.mxu2 %v641_v30  ;;  %705 = vmatpush.msra.mxu3 %v641_v30  ;;  %v639_v37 = vld [vmem:[%s1464_s3 + $0x58] sm:$0xff] }
 0x2fd   :  { %v553_v62 = vmul.f32 1.442695, %v551_v15  ;;  %v638_v15 = vld [vmem:[%s1464_s3 + $0x50] sm:$0xff] }
 0x2fe   :  { %647 = vmatpush.msra.mxu2 %v640_v22  ;;  %706 = vmatpush.msra.mxu3 %v640_v22 }
 0x2ff   :  { %v1189_v58 = vpop.eup %723 }
 0x300   :  { %v1196_v27 = vadd.f32 1.0, %v1189_v58  ;;  %v1206_v46 = vpop.eup %725  ;;  %648 = vmatpush.msra.mxu2 %v639_v37  ;;  %707 = vmatpush.msra.mxu3 %v639_v37 }
 0x301   :  { %v1209_v45 = vadd.f32 1.0, %v1206_v46 }
 0x302   :  { %727 = vrcp.f32 %v1196_v27  ;;  %v310_v43 = vand.u32 2147483647, %v1196_v27  ;;  %vm306_vm12 = vweird.f32 %v1196_v27  ;;  %v312_v17 = vand.u32 2147483648, %v1196_v27  ;;  %649 = vmatpush.msra.mxu2 %v638_v15  ;;  %708 = vmatpush.msra.mxu3 %v638_v15  ;;  %v635_v15 = vld [vmem:[%s1464_s3 + $0x38] sm:$0xff] }
 0x303   :  { %729 = vpow2.f32 %v555_v40  ;;  %v327_v0 = vand.u32 2147483648, %v1209_v45  ;;  %vm321_vm15 = vweird.f32 %v1209_v45 }
 0x304   :  { %731 = vpow2.f32 %v553_v62  ;;  %vm1271_vm14 = vcmp.eq.f32.partialorder %v310_v43, 8.507059e+37  ;;  %v161_v43 = vshll.u32 %v160_v20, 16  ;;  %650 = vmatpush.msra.mxu2 %v637_v2  ;;  %709 = vmatpush.msra.mxu3 %v637_v2 }
 0x305   :  { %733 = vrcp.f32 %v1209_v45 }
 0x306   :  { %651 = vmatpush.msra.mxu2 %v636_v63  ;;  %710 = vmatpush.msra.mxu3 %v636_v63 }
 0x308   :  { %v1211_v57 = vpop.eup %727  ;;  %652 = vmatpush.msra.mxu2 %v635_v15  ;;  %711 = vmatpush.msra.mxu3 %v635_v15 }
 0x309   :  { %v1214_v12 = vpop.eup %729  ;;  %v302_v31 = vmul.f32 %v1211_v57, %v1196_v27  ;;  %vm307_vm11 = vweird.f32 %v1211_v57 }
 0x30a   :  { %v1219_v61 = vadd.f32 1.0, %v1214_v12  ;;  %v1221_v59 = vpop.eup %731  ;;  %vm1263_vm13 = vmor %vm306_vm12, %vm307_vm11 }
 0x30b   :  { %v303_v52 = vsub.f32 1.0, %v302_v31  ;;  %v1223_v1 = vpop.eup %733  ;;  %v1230_v5 = vadd.f32 1.0, %v1221_v59 }
 0x30c   :  { %735 = vrcp.f32 %v1219_v61  ;;  %v317_v29 = vmul.f32 %v1223_v1, %v1209_v45  ;;  %vm322_vm2 = vweird.f32 %v1223_v1  ;;  %v585_v9 = vand.u32 2147483648, %v1219_v61 }
 0x30d   :  { %v304_v51 = vmul.f32 %v1211_v57, %v303_v52  ;;  %737 = vrcp.f32 %v1230_v5  ;;  %vm1331_vm4 = vmor %vm321_vm15, %vm322_vm2  ;;  %vm579_vm5 = vweird.f32 %v1219_v61  ;;  %vm564_vm11 = vweird.f32 %v1230_v5 }
 0x30e   :  { %v318_v33 = vsub.f32 1.0, %v317_v29  ;;  %v250_v29 = vshll.u32 %v249_v36, 16 }
 0x30f   :  { %v305_v32 = vadd.f32 %v1211_v57, %v304_v51  ;;  %v415_v51 = vshll.u32 %v414_v35, 16  ;;  %v1288_v35 = vor.u32 1.1754944e-38, %v327_v0 }
 0x310   :  { %v319_v31 = vmul.f32 %v1223_v1, %v318_v33  ;;  %v325_v33 = vand.u32 2147483647, %v1209_v45 }
 0x311   :  { %v309_v25 = vsel %vm1263_vm13, %v1211_v57, %v305_v32  ;;  %v313_v32 = vor.u32 1.1754944e-38, %v312_v17 }
 0x312   :  { %v1250_v48 = vpop.eup %735  ;;  %v1297_v17 = vadd.f32 %v1223_v1, %v319_v31  ;;  %v429_v31 = vcvt.f32.s32 %v1131_v39  ;;  %vm1309_vm3 = vcmp.eq.f32.partialorder %v325_v33, 8.507059e+37 }
 0x313   :  { %v575_v52 = vmul.f32 %v1250_v48, %v1219_v61  ;;  %v1281_v57 = vpop.eup %737  ;;  %v1294_v36 = vsel %vm1271_vm14, %v313_v32, %v309_v25  ;;  %v175_v25 = vcvt.f32.s32 %v1133_v8  ;;  %vm580_vm12 = vweird.f32 %v1250_v48 }
 0x314   :  { %v560_v62 = vmul.f32 %v1281_v57, %v1230_v5  ;;  %v324_v32 = vsel %vm1331_vm4, %v1223_v1, %v1297_v17  ;;  %v430_v63 = vshll.u32 %v429_v31, 16  ;;  %v631_v31 = vld [vmem:[%s1464_s3 + $0x18] sm:$0xff]  ;;  %vm565_vm14 = vweird.f32 %v1281_v57  ;;  %vm1404_vm15 = vmor %vm579_vm5, %vm580_vm12 }
 0x315   :  { %v576_v2 = vsub.f32 1.0, %v575_v52  ;;  %v264_v52 = vcvt.f32.s32 %v1135_v44  ;;  %v176_v33 = vshll.u32 %v175_v25, 16  ;;  %v329_v44 = vsel %vm1309_vm3, %v1288_v35, %v324_v32 }
 0x316   :  { %v570_v35 = vand.u32 2147483648, %v1230_v5  ;;  %vm592_vm4 = vcmp.eq.s32.totalorder %v823_v7, %v1026_v18 }
 0x317   :  { %v577_v45 = vmul.f32 %v1250_v48, %v576_v2  ;;  %v265_v1 = vshll.u32 %v264_v52, 16  ;;  %v568_v52 = vand.u32 2147483647, %v1230_v5 }
 0x318   :  { %v571_v5 = vor.u32 1.1754944e-38, %v570_v35 }
 0x35b   :  { %v247_v40 = vpop.xlane.xlu2 %246  ;;  %v412_v27 = vpop.xlane.xlu1 %411 }
 0x35c   :  { %v248_v55 = vcvt.f32.s32 %v247_v40  ;;  %v158_v30 = vpop.xlane.xlu0 %157  ;;  %v413_v22 = vcvt.f32.s32 %v412_v27  ;;  %v1303_v27 = vpop.f32.mrf.mxu0 }
 0x35d   :  { %v159_v37 = vcvt.f32.s32 %v158_v30  ;;  %v331_v30 = vmul.f32 %v1189_v58, %v1294_v36 }
 0x35e   :  { %v251_v3 = vadd.s32 %v250_v29, %v248_v55  ;;  %v416_v6 = vadd.s32 %v415_v51, %v413_v22  ;;  %v608_v55 = vmul.f32 %v1241_v4, %v1241_v4 }
 0x35f   :  { %v162_v20 = vadd.s32 %v161_v43, %v159_v37  ;;  %v609_v43 = vmul.f32 %v1303_v27, %v1303_v27  ;;  %v561_v37 = vsub.f32 1.0, %v560_v62 }
 0x360   :  { %v693_v0 = vadd.s32 4294967288, %v251_v3  ;;  %v697_v40 = vadd.s32 4294967280, %v416_v6  ;;  %v583_v3 = vand.u32 2147483647, %v1219_v61  ;;  %v634_v6 = vld [vmem:[%s1464_s3 + $0x30] sm:$0xff]  ;;  %v610_v17 = vmul.f32 %v608_v55, %v1241_v4 }
 0x361   :  { %v287_v51 = vmul.u32 8, %v162_v20  ;;  %653 = vmatpush.msra.mxu2 %v634_v6  ;;  %712 = vmatpush.msra.mxu3 %v634_v6  ;;  %v611_v34 = vmul.f32 %v609_v43, %v1303_v27  ;;  %v562_v6 = vmul.f32 %v1281_v57, %v561_v37  ;;  %v630_v43 = vld [vmem:[%s1464_s3 + $0x10] sm:$0xff]  ;;  %v578_v37 = vadd.f32 %v1250_v48, %v577_v45 }
 0x362   :  { %v285_v8 = vadd.s32 %v693_v0, %v273_v16  ;;  %v545_v39 = vmul.u32 8, %v697_v40  ;;  %v633_v16 = vld [vmem:[%s1464_s3 + $0x28] sm:$0xff]  ;;  %v632_v0 = vld [vmem:[%s1464_s3 + $0x20] sm:$0xff]  ;;  %vm1373_vm13 = vcmp.eq.f32.partialorder %v583_v3, 8.507059e+37 }
 0x363   :  { %v289_v22 = vadd.s32 %v946_v19, %v287_v51  ;;  %v427_v19 = vpop.xlane.xlu2 %426  ;;  %654 = vmatpush.msra.mxu2 %v633_v16  ;;  %713 = vmatpush.msra.mxu3 %v633_v16  ;;  %v613_v16 = vmul.f32 0.044715, %v611_v34  ;;  %v586_v34 = vor.u32 1.1754944e-38, %v585_v9 }
 0x364   :  { %v1340_v58 = vadd.s32 %v1013_v11, %v545_v39  ;;  %v428_v15 = vcvt.f32.s32 %v427_v19  ;;  %v173_v11 = vpop.xlane.xlu1 %172 }
 0x365   :  { %v291_v20 = vsel %vm281_vm8, %v285_v8, %v289_v22  ;;  %v262_v40 = vpop.xlane.xlu0 %261  ;;  %v174_v2 = vcvt.f32.s32 %v173_v11  ;;  %655 = vmatpush.msra.mxu2 %v632_v0  ;;  %714 = vmatpush.msra.mxu3 %v632_v0  ;;  %vm334_vm8 = vcmp.eq.s32.totalorder %v823_v7, %v1003_v56  ;;  %v522_v8 = vcvt.f32.s32 %v1140_v23 }
 0x366   :  { %vm335_vm6 = vcmp.eq.s32.totalorder %v823_v7, %v291_v20  ;;  %v431_v62 = vadd.s32 %v430_v63, %v428_v15  ;;  %v263_v25 = vcvt.f32.s32 %v262_v40  ;;  %v563_v20 = vadd.f32 %v1281_v57, %v562_v6 }
 0x367   :  { %v337_v13 = vsel %vm335_vm6, %v331_v30, 0.0  ;;  %v177_v51 = vadd.s32 %v176_v33, %v174_v2  ;;  %656 = vmatpush.msra.mxu2 %v631_v31  ;;  %715 = vmatpush.msra.mxu3 %v631_v31  ;;  %v629_v33 = vld [vmem:[%s1464_s3 + $0x8] sm:$0xff]  ;;  %v523_v29 = vshll.u32 %v522_v8, 16  ;;  %v508_v0 = vshll.u32 %v507_v14, 16 }
 0x368   :  { %v1367_v55 = vsel %vm333_vm1, %v1294_v36, %v337_v13  ;;  %v698_v39 = vadd.s32 4294967280, %v431_v62  ;;  %v266_v30 = vadd.s32 %v265_v1, %v263_v25  ;;  %v612_v36 = vmul.f32 0.044715, %v610_v17  ;;  %vm1419_vm1 = vmor %vm564_vm11, %vm565_vm14 }
 0x369   :  { %v288_v23 = vmul.u32 8, %v177_v51  ;;  %657 = vmatpush.msra.mxu2 %v630_v43  ;;  %716 = vmatpush.msra.mxu3 %v630_v43  ;;  %v332_v17 = vmul.f32 %v1206_v46, %v329_v44  ;;  %v582_v46 = vsel %vm1404_vm15, %v1250_v48, %v578_v37  ;;  %v567_v26 = vsel %vm1419_vm1, %v1281_v57, %v563_v20 }
 0x36a   :  { %v546_v19 = vmul.u32 8, %v698_v39  ;;  %v694_v3 = vadd.s32 4294967288, %v266_v30  ;;  %v614_v1 = vadd.f32 %v612_v36, %v1241_v4  ;;  %v587_v31 = vsel %vm1373_vm13, %v586_v34, %v582_v46 }
 0x36b   :  { %v290_v63 = vadd.s32 %v985_v53, %v288_v23  ;;  %v628_v53 = vld [vmem:[%s1464_s3] sm:$0xff]  ;;  %658 = vmatpush.msra.mxu2 %v629_v33  ;;  %717 = vmatpush.msra.mxu3 %v629_v33  ;;  %v1486_v6 = vmul.u32 8, %v998_v21  ;;  %v1487_v39 = vmul.u32 8, %v990_v50  ;;  %s769_s3 = smov [#allocation2]  }
 0x36c   :  { %v520_v28 = vpop.xlane.xlu2 %519  ;;  %v548_v32 = vadd.s32 %v1011_v10, %v546_v19  ;;  %v286_v45 = vadd.s32 %v694_v3, %v274_v49  ;;  %v505_v11 = vpop.xlane.xlu1 %504  ;;  %v615_v49 = vadd.f32 %v613_v16, %v1303_v27  ;;  %v616_v25 = vmul.f32 0.7978846, %v614_v1  ;;  %s673_s11 = sshll.u32 %s769_s3, 4  ;;  %s674_s11 = int_to_ptr.vmem [resolvable:$true] %s673_s11 }
 0x36d   :  { %v521_v15 = vcvt.f32.s32 %v520_v28  ;;  %v506_v42 = vcvt.f32.s32 %v505_v11  ;;  %659 = vmatpush.msra.mxu2 %v628_v53  ;;  %718 = vmatpush.msra.mxu3 %v628_v53 }
 0x36e   :  { %v292_v40 = vsel %vm282_vm7, %v286_v45, %v290_v63  ;;  %vm569_vm7 = vcmp.eq.f32.partialorder %v568_v52, 8.507059e+37  ;;  %v617_v9 = vmul.f32 0.7978846, %v615_v49  ;;  %v590_v52 = vmul.f32 %v1214_v12, %v587_v31 }
 0x36f   :  { %v524_v2 = vadd.s32 %v523_v29, %v521_v15  ;;  %vm336_vm2 = vcmp.eq.s32.totalorder %v823_v7, %v292_v40  ;;  %v509_v38 = vadd.s32 %v508_v0, %v506_v42  ;;  %v572_v8 = vsel %vm569_vm7, %v571_v5, %v567_v26 }
 0x370   :  { %v338_v48 = vsel %vm336_vm2, %v332_v17, 0.0  ;;  %739 = vtanh.f32 %v616_v25  ;;  %v589_v56 = vmul.f32 %v1221_v59, %v572_v8 }
 0x371   :  { %v702_v62 = vadd.s32 4294967272, %v524_v2  ;;  %v701_v51 = vadd.s32 4294967272, %v509_v38  ;;  %v340_v61 = vsel %vm334_vm8, %v329_v44, %v338_v48  ;;  %741 = vtanh.f32 %v617_v9 }
 0x373   :  { %v544_v57 = vadd.s32 %v702_v62, %v1486_v6  ;;  %v543_v30 = vadd.s32 %v701_v51, %v1487_v39 }
 0x375   :  { %v550_v22 = vsel %vm540_vm9, %v544_v57, %v548_v32  ;;  %v549_v21 = vsel %vm539_vm10, %v543_v30, %v1340_v58  ;;  %vm591_vm9 = vcmp.eq.s32.totalorder %v823_v7, %v1031_v24 }
 0x376   :  { %vm594_vm3 = vcmp.eq.s32.totalorder %v823_v7, %v550_v22  ;;  %vm593_vm5 = vcmp.eq.s32.totalorder %v823_v7, %v549_v21  ;;  %v740_v14 = vpop.eup %739 }
 0x377   :  { %v596_v50 = vsel %vm594_vm3, %v590_v52, 0.0  ;;  %v595_v60 = vsel %vm593_vm5, %v589_v56, 0.0  ;;  %v742_v54 = vpop.eup %741  ;;  %v620_v44 = vadd.f32 1.0, %v740_v14 }
 0x378   :  { %v598_v41 = vsel %vm592_vm4, %v587_v31, %v596_v50  ;;  %v597_v12 = vsel %vm591_vm9, %v572_v8, %v595_v60  ;;  %v621_v18 = vadd.f32 1.0, %v742_v54 }
 0x379   :  { %v600_v43 = vadd.f32 %v598_v41, %v340_v61  ;;  %v599_v59 = vadd.f32 %v597_v12, %v1367_v55  ;;  %v622_v19 = vmul.f32 0.5, %v620_v44 }
 0x37a   :  { %v623_v3 = vmul.f32 0.5, %v621_v18 }
 0x37b   :  { %v601_v36 = vadd.f32 %v600_v43, %v599_v59  ;;  %v624_v7 = vmul.f32 %v622_v19, %v1241_v4 }
 0x37c   :  { %v625_v24 = vmul.f32 %v623_v3, %v1303_v27 }
 0x37d   :  { %v602_v47 = vrot.slane %v601_v36, 4 }
 0x37f   :  { %v603_v58 = vadd.f32 %v602_v47, %v601_v36 }
 0x381   :  { %v604_v23 = vrot.slane %v603_v58, 2 }
 0x383   :  { %v605_v16 = vadd.f32 %v604_v23, %v603_v58 }
 0x385   :  { %v606_v37 = vrot.slane %v605_v16, 1 }
 0x387   :  { %v607_v33 = vadd.f32 %v606_v37, %v605_v16 }
 0x389   :  { %v626_v63 = vmul.f32 %v624_v7, %v607_v33  ;;  %v627_v28 = vmul.f32 %v625_v24, %v607_v33 }
 0x38b   :  { %660 = vmatmul.f32.vlgmr.msra.gmra.mxu2 %v626_v63  ;;  %663 = vmatmul.f32.vlgmr.msra.gmra.mxu3 %v627_v28 }
 0x40e   :  { %v661_v55 = vpop.f32.mrf.mxu2  ;;  %v664_v20 = vpop.f32.mrf.mxu3 }
 0x40f   :  { %667 = vst.msk [vmem:[#allocation2] sm:$0xff] %vm28_vm0, %v661_v55 }
 0x410   :  { %668 = vst.msk [vmem:[#allocation2 + $0x8] sm:$0xff] %vm28_vm0, %v664_v20 }
 0x411   :  { %681 = dma.vmem_to_hbm [thread:$0]  %s674_s11, 256, %s676_s14, [#allocation3], %s770_s15, %s770_s15, %s771_s16  }
 0x412   :  { %767 = dma.done.wait [#allocation3], 256  }
 0x413   :  { %768 = vsyncadd [#allocation3], 4294967040 }
 0x414   :  { %686 = vsyncpa [#allocation3], 1 }

</bundles_post_ra>
